<compile_context>
chip_gen: v5e
topology: v5e:2x2
jax: 0.10.0
libtpu: 0.0.40
codegen_flags: <defaults>
</compile_context>

<pallas_src>
import functools

import jax
import jax.numpy as jnp
from jax.experimental import pallas as pl
from jax.experimental.pallas import tpu as pltpu

NDIMS = 17            # model input / output feature count
HIDDEN = 128          # hidden width
F_PAD = 128           # lane-padded feature width (x / w1 / w3 / output)
BN_EPS = 1e-5
_VMEM_LIMIT = 32 * 1024 * 1024


# ----------------------------------------------------------------------------
# Kernels
# ----------------------------------------------------------------------------
def _fused_kernel(x_ref, w1_ref, b1_ref, g1_ref, be1_ref,
                  w2_ref, b2_ref, g2_ref, be2_ref,
                  w3_ref, b3_ref, o_ref, *, batch):
    """Whole batch in one VMEM block -> exact training-mode BN statistics."""
    inv_b = 1.0 / float(batch)

    def linear(h, w_ref, b_ref):
        return jnp.dot(h.astype(w_ref.dtype), w_ref[...],
                       preferred_element_type=jnp.float32) + b_ref[...]

    def bn_relu(h, g_ref, be_ref):
        # One-pass batch stats + folded scale/shift FMA.
        mean = jnp.sum(h, axis=0, keepdims=True) * inv_b
        mean_sq = jnp.sum(h * h, axis=0, keepdims=True) * inv_b
        var = jnp.maximum(mean_sq - mean * mean, 0.0)
        scale = g_ref[...] * jax.lax.rsqrt(var + BN_EPS)      # (1, 128)
        shift = be_ref[...] - mean * scale                    # (1, 128)
        return jnp.maximum(h * scale + shift, 0.0)

    h = bn_relu(linear(x_ref[...], w1_ref, b1_ref), g1_ref, be1_ref)
    h = bn_relu(linear(h, w2_ref, b2_ref), g2_ref, be2_ref)
    o_ref[...] = jax.nn.sigmoid(linear(h, w3_ref, b3_ref))    # lane-dense 128-wide store


def _tile_linear_stats_kernel(scale_ref, shift_ref, h_ref, w_ref, b_ref,
                              pre_ref, stats_ref, *,
                              batch, block_b, apply_input_bn_relu):
    """Per batch-tile: (optional folded BN+ReLU) -> Linear -> write pre-activation
    plus this tile's partial sum / sum-of-squares for the NEXT BN layer."""
    h = h_ref[...]
    if apply_input_bn_relu:
        h = jnp.maximum(h * scale_ref[...] + shift_ref[...], 0.0)

    pre = jnp.dot(h.astype(w_ref.dtype), w_ref[...],
                  preferred_element_type=jnp.float32) + b_ref[...]
    pre_ref[...] = pre

    # Exclude zero-padded batch rows from the statistics (only when padding exists).
    if batch % block_b != 0:
        row = (jax.lax.broadcasted_iota(jnp.int32, (block_b, 1), 0)
               + pl.program_id(0) * block_b)
        masked = jnp.where(row < batch, pre, 0.0)
    else:
        masked = pre
    psum = jnp.sum(masked, axis=0, keepdims=True)          # (1, 128)
    psumsq = jnp.sum(masked * pre, axis=0, keepdims=True)  # (1, 128)

    # Pack partial stats into a dense (8, 128) slab: row 0 = sum, row 1 = sum_sq.
    rows = jax.lax.broadcasted_iota(jnp.int32, (8, F_PAD), 0)
    stats_ref[...] = jnp.where(rows == 0, psum,
                               jnp.where(rows == 1, psumsq, 0.0))


def _tile_final_kernel(scale_ref, shift_ref, h_ref, w_ref, b_ref, o_ref):
    """Per batch-tile: folded BN+ReLU -> Linear(128->128 padded) -> Sigmoid."""
    h = jnp.maximum(h_ref[...] * scale_ref[...] + shift_ref[...], 0.0)
    logits = jnp.dot(h.astype(w_ref.dtype), w_ref[...],
                     preferred_element_type=jnp.float32) + b_ref[...]
    o_ref[...] = jax.nn.sigmoid(logits)


# ----------------------------------------------------------------------------
# Wrappers
# ----------------------------------------------------------------------------
def _prepare_weights(params, matmul_dtype):
    """Pad the 17-wide dims to 128 (lane-dense) and cast matmul weights."""
    w1 = jnp.pad(params["w1"], ((0, F_PAD - NDIMS), (0, 0))).astype(matmul_dtype)
    w2 = params["w2"].astype(matmul_dtype)
    w3 = jnp.pad(params["w3"], ((0, 0), (0, F_PAD - NDIMS))).astype(matmul_dtype)
    b3 = jnp.pad(params["b3"], ((0, 0), (0, F_PAD - NDIMS)))
    return w1, w2, w3, b3


def generator_forward_fused(x, params, *, matmul_dtype=jnp.float32):
    batch = x.shape[0]
    xp = jnp.pad(x.astype(jnp.float32), ((0, 0), (0, F_PAD - NDIMS)))
    w1, w2, w3, b3 = _prepare_weights(params, matmul_dtype)
    args = (xp, w1, params["b1"], params["g1"], params["be1"],
            w2, params["b2"], params["g2"], params["be2"], w3, b3)

    wbytes = sum(int(a.size) * a.dtype.itemsize for a in args[1:])
    cost = pl.CostEstimate(
        flops=2 * batch * F_PAD * F_PAD * 3,
        transcendentals=batch * F_PAD + 2 * F_PAD,
        bytes_accessed=2 * batch * F_PAD * 4 + wbytes)

    vmem = pltpu.MemorySpace.VMEM
    out = pl.pallas_call(
        functools.partial(_fused_kernel, batch=batch),
        out_shape=jax.ShapeDtypeStruct((batch, F_PAD), jnp.float32),
        in_specs=[pl.BlockSpec(memory_space=vmem) for _ in args],
        out_specs=pl.BlockSpec(memory_space=vmem),
        compiler_params=pltpu.CompilerParams(vmem_limit_bytes=_VMEM_LIMIT),
        cost_estimate=cost,
    )(*args)
    return out[:, :NDIMS]


def generator_forward_tiled(x, params, *, block_b=512, matmul_dtype=jnp.float32):
    batch = x.shape[0]
    block_b = max(8, (block_b // 8) * 8)                       # sublane-aligned tile
    block_b = min(block_b, max(8, ((batch + 7) // 8) * 8))     # don't overshoot tiny B
    num_tiles = -(-batch // block_b)
    b_pad = num_tiles * block_b

    xp = jnp.zeros((b_pad, F_PAD), jnp.float32).at[:batch, :NDIMS].set(
        x.astype(jnp.float32))
    w1, w2, w3, b3 = _prepare_weights(params, matmul_dtype)
    ones = jnp.ones((1, F_PAD), jnp.float32)
    zeros = jnp.zeros((1, F_PAD), jnp.float32)

    compiler_params = pltpu.CompilerParams(
        dimension_semantics=("parallel",),        # batch tiles are independent
        vmem_limit_bytes=_VMEM_LIMIT)

    row_spec = pl.BlockSpec((1, F_PAD), lambda i: (0, 0))        # resident (1,128) rows
    mat_spec = pl.BlockSpec((F_PAD, F_PAD), lambda i: (0, 0))    # resident weights
    act_spec = pl.BlockSpec((block_b, F_PAD), lambda i: (i, 0))  # per-tile activations
    stats_spec = pl.BlockSpec((8, F_PAD), lambda i: (i, 0))      # per-tile partial stats

    wbytes = F_PAD * F_PAD * w2.dtype.itemsize
    mm_cost = pl.CostEstimate(
        flops=2 * b_pad * F_PAD * F_PAD,
        transcendentals=2 * F_PAD,
        bytes_accessed=2 * b_pad * F_PAD * 4 + wbytes)
    final_cost = pl.CostEstimate(
        flops=2 * b_pad * F_PAD * F_PAD,
        transcendentals=b_pad * F_PAD,
        bytes_accessed=2 * b_pad * F_PAD * 4 + wbytes)

    def linear_stats_call(scale, shift, h, w, b, apply_bn):
        kernel = functools.partial(
            _tile_linear_stats_kernel, batch=batch, block_b=block_b,
            apply_input_bn_relu=apply_bn)
        return pl.pallas_call(
            kernel,
            grid=(num_tiles,),
            in_specs=[row_spec, row_spec, act_spec, mat_spec, row_spec],
            out_specs=(act_spec, stats_spec),
            out_shape=(jax.ShapeDtypeStruct((b_pad, F_PAD), jnp.float32),
                       jax.ShapeDtypeStruct((num_tiles * 8, F_PAD), jnp.float32)),
            compiler_params=compiler_params,
            cost_estimate=mm_cost,
        )(scale, shift, h, w, b)

    def stats_to_scale_shift(stats, gamma, beta):
        stats = stats.reshape(num_tiles, 8, F_PAD)
        mean = stats[:, 0, :].sum(axis=0, keepdims=True) / batch
        mean_sq = stats[:, 1, :].sum(axis=0, keepdims=True) / batch
        var = jnp.maximum(mean_sq - mean * mean, 0.0)
        scale = gamma * jax.lax.rsqrt(var + BN_EPS)
        shift = beta - mean * scale
        return scale, shift

    def final_call(scale, shift, h, w, b):
        return pl.pallas_call(
            _tile_final_kernel,
            grid=(num_tiles,),
            in_specs=[row_spec, row_spec, act_spec, mat_spec, row_spec],
            out_specs=act_spec,
            out_shape=jax.ShapeDtypeStruct((b_pad, F_PAD), jnp.float32),
            compiler_params=compiler_params,
            cost_estimate=final_cost,
        )(scale, shift, h, w, b)

    pre1, stats1 = linear_stats_call(ones, zeros, xp, w1, params["b1"],
                                     apply_bn=False)
    scale1, shift1 = stats_to_scale_shift(stats1, params["g1"], params["be1"])
    pre2, stats2 = linear_stats_call(scale1, shift1, pre1, w2, params["b2"],
                                     apply_bn=True)
    scale2, shift2 = stats_to_scale_shift(stats2, params["g2"], params["be2"])
    out = final_call(scale2, shift2, pre2, w3, b3)
    return out[:batch, :NDIMS]


def generator_forward(x, params, *, block_b=None, matmul_dtype=jnp.float32):
    """WGAN Generator forward.  x: (B, NDIMS) float32 -> (B, NDIMS) float32."""
    batch = x.shape[0]
    if block_b is None:
        if batch <= 2048:   # whole batch comfortably fits VMEM -> single fused kernel
            return generator_forward_fused(x, params, matmul_dtype=matmul_dtype)
        block_b = 512
    return generator_forward_tiled(x, params, block_b=block_b,
                                   matmul_dtype=matmul_dtype)


# ----------------------------------------------------------------------------
# Params / reference
# ----------------------------------------------------------------------------
def init_params(key):
    """Deterministic init matching the PyTorch module's parameter shapes.
    Linear weights stored as (in_features, out_features)."""
    k1, k2, k3, kb1, kb2, kb3 = jax.random.split(key, 6)

    def lin(kw, kb, fan_in, fan_out):
        bound = 1.0 / jnp.sqrt(jnp.float32(fan_in))
        w = jax.random.uniform(kw, (fan_in, fan_out), jnp.float32, -bound, bound)
        b = jax.random.uniform(kb, (1, fan_out), jnp.float32, -bound, bound)
        return w, b

    w1, b1 = lin(k1, kb1, NDIMS, HIDDEN)
    w2, b2 = lin(k2, kb2, HIDDEN, HIDDEN)
    w3, b3 = lin(k3, kb3, HIDDEN, NDIMS)

    return {
        "w1": w1, "b1": b1,
        "g1": jnp.ones((1, HIDDEN), jnp.float32), "be1": jnp.zeros((1, HIDDEN), jnp.float32),
        "w2": w2, "b2": b2,
        "g2": jnp.ones((1, HIDDEN), jnp.float32), "be2": jnp.zeros((1, HIDDEN), jnp.float32),
        "w3": w3, "b3": b3,
    }


def reference_forward(x, p):
    """Pure-JAX reference of the same math (training-mode BN, biased variance)."""
    h = x @ p["w1"] + p["b1"]
    m = h.mean(0, keepdims=True)
    v = ((h - m) ** 2).mean(0, keepdims=True)
    h = jnp.maximum((h - m) / jnp.sqrt(v + BN_EPS) * p["g1"] + p["be1"], 0.0)
    h = h @ p["w2"] + p["b2"]
    m = h.mean(0, keepdims=True)
    v = ((h - m) ** 2).mean(0, keepdims=True)
    h = jnp.maximum((h - m) / jnp.sqrt(v + BN_EPS) * p["g2"] + p["be2"], 0.0)
    return jax.nn.sigmoid(h @ p["w3"] + p["b3"])


# ----------------------------------------------------------------------------
# Self-test
# ----------------------------------------------------------------------------
if __name__ == "__main__":
    key = jax.random.PRNGKey(0)
    kx, kp = jax.random.split(key)
    params = init_params(kp)

    # 1) Small batch -> fused single-block kernel (exact batch statistics).
    x_small = jax.random.normal(kx, (8, NDIMS), jnp.float32)
    out_small = jax.block_until_ready(generator_forward(x_small, params))
    ref_small = reference_forward(x_small, params)
    assert out_small.shape == (8, NDIMS)
    assert jnp.allclose(out_small, ref_small, atol=1e-4, rtol=1e-4), \
        "fused path mismatch vs JAX reference"

    # 2) Batch-gridded pipelined path (multiple tiles, batch not a multiple of the
    #    tile -> exercises padded-row masking of the batch statistics).
    x_big = jax.random.normal(kx, (300, NDIMS), jnp.float32)
    out_big = jax.block_until_ready(
        generator_forward(x_big, params, block_b=128))
    ref_big = reference_forward(x_big, params)
    assert out_big.shape == (300, NDIMS)
    assert jnp.allclose(out_big, ref_big, atol=1e-4, rtol=1e-4), \
        "tiled path mismatch vs JAX reference"

    # 3) bf16-MXU variant (v6e/v7x feedback); looser tolerance for reduced matmul
    #    precision -- BN/sigmoid math stays f32.
    out_bf16 = jax.block_until_ready(
        generator_forward(x_big, params, block_b=128, matmul_dtype=jnp.bfloat16))
    assert out_bf16.shape == (300, NDIMS)
    assert jnp.allclose(out_bf16, ref_big, atol=5e-2), \
        "bf16 matmul path mismatch vs JAX reference"

    print("KERNEL_OK")
</pallas_src>

<mosaic_0001>
module attributes {stable_mosaic.version = 11 : i64} {
  func.func @_fused_kernel(%arg0: memref<8x128xf32, #tpu.memory_space<vmem>>, %arg1: memref<128x128xf32, #tpu.memory_space<vmem>>, %arg2: memref<1x128xf32, #tpu.memory_space<vmem>>, %arg3: memref<1x128xf32, #tpu.memory_space<vmem>>, %arg4: memref<1x128xf32, #tpu.memory_space<vmem>>, %arg5: memref<128x128xf32, #tpu.memory_space<vmem>>, %arg6: memref<1x128xf32, #tpu.memory_space<vmem>>, %arg7: memref<1x128xf32, #tpu.memory_space<vmem>>, %arg8: memref<1x128xf32, #tpu.memory_space<vmem>>, %arg9: memref<128x128xf32, #tpu.memory_space<vmem>>, %arg10: memref<1x128xf32, #tpu.memory_space<vmem>>, %arg11: memref<8x128xf32, #tpu.memory_space<vmem>>) attributes {dimension_semantics = [], scalar_prefetch = 0 : i64, scratch_operands = 0 : i64, tpu.core_type = #tpu.core_type<tc>} {
    %c0 = arith.constant 0 : index
    %c0_0 = arith.constant 0 : index
    %0 = vector.load %arg0[%c0, %c0_0] : memref<8x128xf32, #tpu.memory_space<vmem>>, vector<8x128xf32>
    %c0_1 = arith.constant 0 : index
    %c0_2 = arith.constant 0 : index
    %1 = vector.load %arg1[%c0_1, %c0_2] : memref<128x128xf32, #tpu.memory_space<vmem>>, vector<128x128xf32>
    %cst = arith.constant dense<0.000000e+00> : vector<8x128xf32>
    %2 = tpu.matmul %0, %1, %cst {dimension_numbers = #tpu.dot_dimension_numbers<[1], [0], [0], [1], [0, 0, 1, 1], [], []>} : vector<8x128xf32>, vector<128x128xf32>, vector<8x128xf32> -> vector<8x128xf32>
    %c0_3 = arith.constant 0 : index
    %c0_4 = arith.constant 0 : index
    %3 = vector.load %arg2[%c0_3, %c0_4] : memref<1x128xf32, #tpu.memory_space<vmem>>, vector<1x128xf32>
    %4 = vector.broadcast %3 : vector<1x128xf32> to vector<8x128xf32>
    %5 = arith.addf %2, %4 : vector<8x128xf32>
    %cst_5 = arith.constant dense<0.000000e+00> : vector<128xf32>
    %6 = vector.multi_reduction <add>, %5, %cst_5 [0] : vector<8x128xf32> to vector<128xf32>
    %7 = vector.shape_cast %6 : vector<128xf32> to vector<1x128xf32>
    %cst_6 = arith.constant 1.250000e-01 : f32
    %8 = vector.broadcast %cst_6 : f32 to vector<1x128xf32>
    %9 = arith.mulf %7, %8 : vector<1x128xf32>
    %10 = arith.mulf %5, %5 : vector<8x128xf32>
    %cst_7 = arith.constant dense<0.000000e+00> : vector<128xf32>
    %11 = vector.multi_reduction <add>, %10, %cst_7 [0] : vector<8x128xf32> to vector<128xf32>
    %12 = vector.shape_cast %11 : vector<128xf32> to vector<1x128xf32>
    %cst_8 = arith.constant 1.250000e-01 : f32
    %13 = vector.broadcast %cst_8 : f32 to vector<1x128xf32>
    %14 = arith.mulf %12, %13 : vector<1x128xf32>
    %15 = arith.mulf %9, %9 : vector<1x128xf32>
    %16 = arith.subf %14, %15 : vector<1x128xf32>
    %cst_9 = arith.constant 0.000000e+00 : f32
    %17 = vector.broadcast %cst_9 : f32 to vector<1x128xf32>
    %18 = arith.maximumf %16, %17 : vector<1x128xf32>
    %c0_10 = arith.constant 0 : index
    %c0_11 = arith.constant 0 : index
    %19 = vector.load %arg3[%c0_10, %c0_11] : memref<1x128xf32, #tpu.memory_space<vmem>>, vector<1x128xf32>
    %cst_12 = arith.constant 9.99999974E-6 : f32
    %20 = vector.broadcast %cst_12 : f32 to vector<1x128xf32>
    %21 = arith.addf %18, %20 : vector<1x128xf32>
    %22 = math.rsqrt %21 : vector<1x128xf32>
    %23 = arith.mulf %19, %22 : vector<1x128xf32>
    %c0_13 = arith.constant 0 : index
    %c0_14 = arith.constant 0 : index
    %24 = vector.load %arg4[%c0_13, %c0_14] : memref<1x128xf32, #tpu.memory_space<vmem>>, vector<1x128xf32>
    %25 = arith.mulf %9, %23 : vector<1x128xf32>
    %26 = arith.subf %24, %25 : vector<1x128xf32>
    %27 = vector.broadcast %23 : vector<1x128xf32> to vector<8x128xf32>
    %28 = arith.mulf %5, %27 : vector<8x128xf32>
    %29 = vector.broadcast %26 : vector<1x128xf32> to vector<8x128xf32>
    %30 = arith.addf %28, %29 : vector<8x128xf32>
    %cst_15 = arith.constant 0.000000e+00 : f32
    %31 = vector.broadcast %cst_15 : f32 to vector<8x128xf32>
    %32 = arith.maximumf %30, %31 : vector<8x128xf32>
    %c0_16 = arith.constant 0 : index
    %c0_17 = arith.constant 0 : index
    %33 = vector.load %arg5[%c0_16, %c0_17] : memref<128x128xf32, #tpu.memory_space<vmem>>, vector<128x128xf32>
    %cst_18 = arith.constant dense<0.000000e+00> : vector<8x128xf32>
    %34 = tpu.matmul %32, %33, %cst_18 {dimension_numbers = #tpu.dot_dimension_numbers<[1], [0], [0], [1], [0, 0, 1, 1], [], []>} : vector<8x128xf32>, vector<128x128xf32>, vector<8x128xf32> -> vector<8x128xf32>
    %c0_19 = arith.constant 0 : index
    %c0_20 = arith.constant 0 : index
    %35 = vector.load %arg6[%c0_19, %c0_20] : memref<1x128xf32, #tpu.memory_space<vmem>>, vector<1x128xf32>
    %36 = vector.broadcast %35 : vector<1x128xf32> to vector<8x128xf32>
    %37 = arith.addf %34, %36 : vector<8x128xf32>
    %cst_21 = arith.constant dense<0.000000e+00> : vector<128xf32>
    %38 = vector.multi_reduction <add>, %37, %cst_21 [0] : vector<8x128xf32> to vector<128xf32>
    %39 = vector.shape_cast %38 : vector<128xf32> to vector<1x128xf32>
    %cst_22 = arith.constant 1.250000e-01 : f32
    %40 = vector.broadcast %cst_22 : f32 to vector<1x128xf32>
    %41 = arith.mulf %39, %40 : vector<1x128xf32>
    %42 = arith.mulf %37, %37 : vector<8x128xf32>
    %cst_23 = arith.constant dense<0.000000e+00> : vector<128xf32>
    %43 = vector.multi_reduction <add>, %42, %cst_23 [0] : vector<8x128xf32> to vector<128xf32>
    %44 = vector.shape_cast %43 : vector<128xf32> to vector<1x128xf32>
    %cst_24 = arith.constant 1.250000e-01 : f32
    %45 = vector.broadcast %cst_24 : f32 to vector<1x128xf32>
    %46 = arith.mulf %44, %45 : vector<1x128xf32>
    %47 = arith.mulf %41, %41 : vector<1x128xf32>
    %48 = arith.subf %46, %47 : vector<1x128xf32>
    %cst_25 = arith.constant 0.000000e+00 : f32
    %49 = vector.broadcast %cst_25 : f32 to vector<1x128xf32>
    %50 = arith.maximumf %48, %49 : vector<1x128xf32>
    %c0_26 = arith.constant 0 : index
    %c0_27 = arith.constant 0 : index
    %51 = vector.load %arg7[%c0_26, %c0_27] : memref<1x128xf32, #tpu.memory_space<vmem>>, vector<1x128xf32>
    %cst_28 = arith.constant 9.99999974E-6 : f32
    %52 = vector.broadcast %cst_28 : f32 to vector<1x128xf32>
    %53 = arith.addf %50, %52 : vector<1x128xf32>
    %54 = math.rsqrt %53 : vector<1x128xf32>
    %55 = arith.mulf %51, %54 : vector<1x128xf32>
    %c0_29 = arith.constant 0 : index
    %c0_30 = arith.constant 0 : index
    %56 = vector.load %arg8[%c0_29, %c0_30] : memref<1x128xf32, #tpu.memory_space<vmem>>, vector<1x128xf32>
    %57 = arith.mulf %41, %55 : vector<1x128xf32>
    %58 = arith.subf %56, %57 : vector<1x128xf32>
    %59 = vector.broadcast %55 : vector<1x128xf32> to vector<8x128xf32>
    %60 = arith.mulf %37, %59 : vector<8x128xf32>
    %61 = vector.broadcast %58 : vector<1x128xf32> to vector<8x128xf32>
    %62 = arith.addf %60, %61 : vector<8x128xf32>
    %cst_31 = arith.constant 0.000000e+00 : f32
    %63 = vector.broadcast %cst_31 : f32 to vector<8x128xf32>
    %64 = arith.maximumf %62, %63 : vector<8x128xf32>
    %c0_32 = arith.constant 0 : index
    %c0_33 = arith.constant 0 : index
    %65 = vector.load %arg9[%c0_32, %c0_33] : memref<128x128xf32, #tpu.memory_space<vmem>>, vector<128x128xf32>
    %cst_34 = arith.constant dense<0.000000e+00> : vector<8x128xf32>
    %66 = tpu.matmul %64, %65, %cst_34 {dimension_numbers = #tpu.dot_dimension_numbers<[1], [0], [0], [1], [0, 0, 1, 1], [], []>} : vector<8x128xf32>, vector<128x128xf32>, vector<8x128xf32> -> vector<8x128xf32>
    %c0_35 = arith.constant 0 : index
    %c0_36 = arith.constant 0 : index
    %67 = vector.load %arg10[%c0_35, %c0_36] : memref<1x128xf32, #tpu.memory_space<vmem>>, vector<1x128xf32>
    %68 = vector.broadcast %67 : vector<1x128xf32> to vector<8x128xf32>
    %69 = arith.addf %66, %68 : vector<8x128xf32>
    %70 = arith.negf %69 : vector<8x128xf32>
    %71 = math.exp %70 : vector<8x128xf32>
    %cst_37 = arith.constant 1.000000e+00 : f32
    %72 = vector.broadcast %cst_37 : f32 to vector<8x128xf32>
    %73 = arith.addf %72, %71 : vector<8x128xf32>
    %74 = arith.divf %72, %73 : vector<8x128xf32>
    %c0_38 = arith.constant 0 : index
    %c0_39 = arith.constant 0 : index
    %75 = vector.load %arg11[%c0_38, %c0_39] : memref<8x128xf32, #tpu.memory_space<vmem>>, vector<8x128xf32>
    tpu.vector_store %arg11[%c0_38, %c0_39], %74 {strides = array<i32>} : memref<8x128xf32, #tpu.memory_space<vmem>>, vector<8x128xf32>,
    return
  }
}

</mosaic_0001>

<bundles_post_ra>
// kernel: tpu_custom_call.1
= control target key start
LH: loop header
LB: loop body
LE: loop exit
PB: predicated region body
PF: predicated region fallthrough
CT: control target
= control target key end

     0   :  { %16 = vsyncpa [#allocation3], 0  ;;  %s596_s0 = inlined_call_operand.hbm [shape: f32[8,128], index: 0, kind: input, shape index: {}]   ;;  %s597_s1 = inlined_call_operand.hbm [shape: f32[128,128], index: 1, kind: input, shape index: {}]   ;;  %s598_s2 = inlined_call_operand.vmem [shape: f32[1,128], index: 2, kind: input, shape index: {}]   ;;  %s599_s3 = inlined_call_operand.vmem [shape: f32[1,128], index: 3, kind: input, shape index: {}]   ;;  %s600_s4 = inlined_call_operand.vmem [shape: f32[1,128], index: 4, kind: input, shape index: {}]   ;;  %s601_s5 = inlined_call_operand.hbm [shape: f32[128,128], index: 5, kind: input, shape index: {}]   ;;  %s602_s6 = inlined_call_operand.vmem [shape: f32[1,128], index: 6, kind: input, shape index: {}]   ;;  %s603_s7 = inlined_call_operand.vmem [shape: f32[1,128], index: 7, kind: input, shape index: {}]   ;;  %s604_s8 = inlined_call_operand.vmem [shape: f32[1,128], index: 8, kind: input, shape index: {}]   ;;  %s605_s9 = inlined_call_operand.hbm [shape: f32[128,128], index: 9, kind: input, shape index: {}]   ;;  %s606_s10 = inlined_call_operand.vmem [shape: f32[1,128], index: 10, kind: input, shape index: {}]   ;;  %s607_s11 = inlined_call_operand.hbm [shape: f32[8,128], index: 11, kind: output, shape index: {}]  }
   0x1   :  { %17 = vsyncpa [#allocation6], 0 }
   0x2   :  { %18 = vsyncpa [#allocation9], 0  ;;  %s35_s19 = sshll.u32 %s597_s1, 4  ;;  %s36_s19 = int_to_ptr.hbm [resolvable:$true] %s35_s19 }
   0x3   :  { %19 = vsyncpa [#allocation4], 0  ;;  %s493_s20 = smov [#allocation5]   ;;  %s25_s24 = sshll.u32 %s596_s0, 4  ;;  %s26_s24 = int_to_ptr.hbm [resolvable:$true] %s25_s24 }
   0x4   :  { %s37_s21 = sshll.u32 %s493_s20, 4  ;;  %s494_s25 = smov 128   ;;  %s38_s21 = int_to_ptr.vmem [resolvable:$true] %s37_s21 }
   0x5   :  { %s495_s26 = smov 8   ;;  %s496_s27 = smov [#allocation2]  }
   0x6   :  { %43 = dma.hbm_to_vmem [thread:$0]  %s36_s19, 2048, %s38_s21, [#allocation6], %s494_s25, %s494_s25, %s495_s26  }
   0x7   :  { %s27_s28 = sshll.u32 %s496_s27, 4  ;;  %s54_s12 = sshll.u32 %s601_s5, 4  ;;  %s28_s28 = int_to_ptr.vmem [resolvable:$true] %s27_s28  ;;  %s55_s12 = int_to_ptr.hbm [resolvable:$true] %s54_s12 }
   0x8   :  { %30 = dma.hbm_to_vmem [thread:$0]  %s26_s24, 128, %s28_s28, [#allocation3]  }
   0x9   :  { %s73_s14 = sshll.u32 %s605_s9, 4  ;;  %s497_s15 = smov [#allocation7]   ;;  %s74_s14 = int_to_ptr.hbm [resolvable:$true] %s73_s14 }
   0xa   :  { %s56_s16 = sshll.u32 %s497_s15, 4  ;;  %s498_s0 = smov [#allocation8]   ;;  %s57_s16 = int_to_ptr.vmem [resolvable:$true] %s56_s16 }
   0xb   :  { %62 = dma.hbm_to_vmem [thread:$0]  %s55_s12, 2048, %s57_s16, [#allocation6], %s494_s25, %s494_s25, %s495_s26  }
   0xc   :  { %s75_s17 = sshll.u32 %s498_s0, 4  ;;  %s76_s17 = int_to_ptr.vmem [resolvable:$true] %s75_s17 }
   0xd   :  { %81 = dma.hbm_to_vmem [thread:$0]  %s74_s14, 2048, %s76_s17, [#allocation9], %s494_s25, %s494_s25, %s495_s26  }
   0xe   :  { %485 = dma.done.wait [#allocation3], 128  }
   0xf   :  { %486 = vsyncadd [#allocation3], 4294967168 }
  0x10   :  { %487 = dma.done.wait [#allocation6], 4096  }
  0x11   :  { %488 = vsyncadd [#allocation6], 4294963200 }
  0x12   :  { %489 = dma.done.wait [#allocation9], 2048  }
  0x13   :  { %490 = vsyncadd [#allocation9], 4294965248  ;;  %v116_v0 = vld [vmem:[#allocation5 + $0x78] sm:$0xff]  ;;  %v115_v1 = vld [vmem:[#allocation5 + $0x70] sm:$0xff] }
  0x14   :  { %121 = vmatpush.msra.mxu0 %v116_v0  ;;  %v114_v2 = vld [vmem:[#allocation5 + $0x68] sm:$0xff]  ;;  %v113_v3 = vld [vmem:[#allocation5 + $0x60] sm:$0xff]  ;;  %v112_v4 = vld [vmem:[#allocation5 + $0x58] sm:$0xff] }
  0x15   :  { %v111_v5 = vld [vmem:[#allocation5 + $0x50] sm:$0xff]  ;;  %v110_v6 = vld [vmem:[#allocation5 + $0x48] sm:$0xff]  ;;  %v109_v7 = vld [vmem:[#allocation5 + $0x40] sm:$0xff] }
  0x16   :  { %122 = vmatpush.msra.mxu0 %v115_v1  ;;  %v108_v8 = vld [vmem:[#allocation5 + $0x38] sm:$0xff]  ;;  %v107_v9 = vld [vmem:[#allocation5 + $0x30] sm:$0xff]  ;;  %v106_v10 = vld [vmem:[#allocation5 + $0x28] sm:$0xff] }
  0x17   :  { %v105_v11 = vld [vmem:[#allocation5 + $0x20] sm:$0xff]  ;;  %v104_v12 = vld [vmem:[#allocation5 + $0x18] sm:$0xff]  ;;  %v103_v13 = vld [vmem:[#allocation5 + $0x10] sm:$0xff] }
  0x18   :  { %123 = vmatpush.msra.mxu0 %v114_v2  ;;  %v102_v14 = vld [vmem:[#allocation5 + $0x8] sm:$0xff]  ;;  %v101_v15 = vld [vmem:[#allocation5] sm:$0xff]  ;;  %v100_v16 = vld [vmem:[#allocation2] sm:$0xff] }
  0x19   :  { %v199_v17 = vld [vmem:[#allocation7 + $0x78] sm:$0xff]  ;;  %v198_v18 = vld [vmem:[#allocation7 + $0x70] sm:$0xff]  ;;  %v197_v19 = vld [vmem:[#allocation7 + $0x68] sm:$0xff] }
  0x1a   :  { %124 = vmatpush.msra.mxu0 %v113_v3  ;;  %204 = vmatpush.msra.mxu1 %v199_v17  ;;  %v196_v20 = vld [vmem:[#allocation7 + $0x60] sm:$0xff]  ;;  %v195_v21 = vld [vmem:[#allocation7 + $0x58] sm:$0xff]  ;;  %v194_v22 = vld [vmem:[#allocation7 + $0x50] sm:$0xff] }
  0x1b   :  { %v193_v23 = vld [vmem:[#allocation7 + $0x48] sm:$0xff]  ;;  %v192_v24 = vld [vmem:[#allocation7 + $0x40] sm:$0xff]  ;;  %v354_v25 = vld [vmem:[%s598_s2] ss:$0 sm:$0xff] }
  0x1c   :  { %125 = vmatpush.msra.mxu0 %v112_v4  ;;  %205 = vmatpush.msra.mxu1 %v198_v18  ;;  %v191_v26 = vld [vmem:[#allocation7 + $0x38] sm:$0xff]  ;;  %v190_v27 = vld [vmem:[#allocation7 + $0x30] sm:$0xff]  ;;  %v189_v30 = vld [vmem:[#allocation7 + $0x28] sm:$0xff] }
  0x1d   :  { %v188_v33 = vld [vmem:[#allocation7 + $0x20] sm:$0xff]  ;;  %v187_v36 = vld [vmem:[#allocation7 + $0x18] sm:$0xff]  ;;  %v186_v39 = vld [vmem:[#allocation7 + $0x10] sm:$0xff] }
  0x1e   :  { %126 = vmatpush.msra.mxu0 %v111_v5  ;;  %206 = vmatpush.msra.mxu1 %v197_v19  ;;  %v185_v42 = vld [vmem:[#allocation7 + $0x8] sm:$0xff]  ;;  %v184_v44 = vld [vmem:[#allocation7] sm:$0xff]  ;;  %v159_v60 = vld [vmem:[%s599_s3] sm:$0x1] }
  0x1f   :  { %v172_v0 = vld [vmem:[%s600_s4] sm:$0x1]  ;;  %v273_v18 = vld [vmem:[#allocation8 + $0x30] sm:$0xff] }
  0x20   :  { %127 = vmatpush.msra.mxu0 %v110_v6  ;;  %207 = vmatpush.msra.mxu1 %v196_v20  ;;  %v274_v17 = vld [vmem:[#allocation8 + $0x38] sm:$0xff] }
  0x22   :  { %128 = vmatpush.msra.mxu0 %v109_v7  ;;  %208 = vmatpush.msra.mxu1 %v195_v21  ;;  %v272_v21 = vld [vmem:[#allocation8 + $0x28] sm:$0xff] }
  0x24   :  { %129 = vmatpush.msra.mxu0 %v108_v8  ;;  %209 = vmatpush.msra.mxu1 %v194_v22  ;;  %v282_v8 = vld [vmem:[#allocation8 + $0x78] sm:$0xff] }
  0x25   :  { %287 = vmatpush.msra.mxu2 %v282_v8 }
  0x26   :  { %130 = vmatpush.msra.mxu0 %v107_v9  ;;  %210 = vmatpush.msra.mxu1 %v193_v23  ;;  %v281_v9 = vld [vmem:[#allocation8 + $0x70] sm:$0xff] }
  0x27   :  { %288 = vmatpush.msra.mxu2 %v281_v9 }
  0x28   :  { %131 = vmatpush.msra.mxu0 %v106_v10  ;;  %211 = vmatpush.msra.mxu1 %v192_v24  ;;  %v280_v10 = vld [vmem:[#allocation8 + $0x68] sm:$0xff]  ;;  %v271_v24 = vld [vmem:[#allocation8 + $0x20] sm:$0xff] }
  0x29   :  { %289 = vmatpush.msra.mxu2 %v280_v10 }
  0x2a   :  { %132 = vmatpush.msra.mxu0 %v105_v11  ;;  %212 = vmatpush.msra.mxu1 %v191_v26  ;;  %v279_v11 = vld [vmem:[#allocation8 + $0x60] sm:$0xff] }
  0x2b   :  { %290 = vmatpush.msra.mxu2 %v279_v11 }
  0x2c   :  { %133 = vmatpush.msra.mxu0 %v104_v12  ;;  %213 = vmatpush.msra.mxu1 %v190_v27  ;;  %v278_v12 = vld [vmem:[#allocation8 + $0x58] sm:$0xff] }
  0x2d   :  { %291 = vmatpush.msra.mxu2 %v278_v12  ;;  %v270_v27 = vld [vmem:[#allocation8 + $0x18] sm:$0xff] }
  0x2e   :  { %134 = vmatpush.msra.mxu0 %v103_v13  ;;  %214 = vmatpush.msra.mxu1 %v189_v30  ;;  %v277_v13 = vld [vmem:[#allocation8 + $0x50] sm:$0xff] }
  0x2f   :  { %292 = vmatpush.msra.mxu2 %v277_v13  ;;  %v269_v30 = vld [vmem:[#allocation8 + $0x10] sm:$0xff] }
  0x30   :  { %135 = vmatpush.msra.mxu0 %v102_v14  ;;  %215 = vmatpush.msra.mxu1 %v188_v33  ;;  %v276_v14 = vld [vmem:[#allocation8 + $0x48] sm:$0xff] }
  0x31   :  { %293 = vmatpush.msra.mxu2 %v276_v14  ;;  %v268_v33 = vld [vmem:[#allocation8 + $0x8] sm:$0xff] }
  0x32   :  { %136 = vmatpush.msra.mxu0 %v101_v15  ;;  %216 = vmatpush.msra.mxu1 %v187_v36  ;;  %v275_v15 = vld [vmem:[#allocation8 + $0x40] sm:$0xff] }
  0x33   :  { %137 = vmatmul.f32.vlgmr.msra.gmra.mxu0 %v100_v16  ;;  %v355_v16 = vld [vmem:[%s602_s6] ss:$0 sm:$0xff]  ;;  %294 = vmatpush.msra.mxu2 %v275_v15 }
  0x34   :  { %217 = vmatpush.msra.mxu1 %v186_v39 }
  0x35   :  { %295 = vmatpush.msra.mxu2 %v274_v17 }
  0x36   :  { %218 = vmatpush.msra.mxu1 %v185_v42 }
  0x37   :  { %296 = vmatpush.msra.mxu2 %v273_v18 }
  0x38   :  { %219 = vmatpush.msra.mxu1 %v184_v44 }
  0x39   :  { %297 = vmatpush.msra.mxu2 %v272_v21 }
  0x3b   :  { %298 = vmatpush.msra.mxu2 %v271_v24 }
  0x3d   :  { %299 = vmatpush.msra.mxu2 %v270_v27 }
  0x3f   :  { %300 = vmatpush.msra.mxu2 %v269_v30 }
  0x41   :  { %301 = vmatpush.msra.mxu2 %v268_v33 }
  0xb0   :  { %v138_v28 = vpop.f32.mrf.mxu0 }
  0xb1   :  { %v139_v29 = vadd.f32 %v354_v25, %v138_v28 }
  0xb3   :  { %v141_v31 = vrot.slane %v139_v29, 4  ;;  %v148_v32 = vmul.f32 %v139_v29, %v139_v29 }
  0xb5   :  { %v142_v34 = vadd.f32 %v141_v31, %v139_v29  ;;  %v149_v35 = vrot.slane %v148_v32, 4 }
  0xb7   :  { %v143_v37 = vrot.slane %v142_v34, 2  ;;  %v150_v38 = vadd.f32 %v149_v35, %v148_v32  ;;  %v267_v35 = vld [vmem:[#allocation8] sm:$0xff] }
  0xb8   :  { %302 = vmatpush.msra.mxu2 %v267_v35 }
  0xb9   :  { %v144_v40 = vadd.f32 %v143_v37, %v142_v34  ;;  %v151_v41 = vrot.slane %v150_v38, 2 }
  0xbb   :  { %v152_v43 = vadd.f32 %v151_v41, %v150_v38  ;;  %v145_v45 = vrot.slane %v144_v40, 1 }
  0xbd   :  { %v153_v46 = vrot.slane %v152_v43, 1  ;;  %v146_v47 = vadd.f32 %v145_v45, %v144_v40 }
  0xbf   :  { %v154_v48 = vadd.f32 %v153_v46, %v152_v43  ;;  %v147_v49 = vmul.f32 0.125, %v146_v47 }
  0xc1   :  { %v155_v50 = vmul.f32 0.125, %v154_v48  ;;  %v156_v51 = vmul.f32 %v147_v49, %v147_v49 }
  0xc3   :  { %v157_v52 = vsub.f32 %v155_v50, %v156_v51  ;;  %v242_v51 = vld [vmem:[%s603_s7] sm:$0x1]  ;;  %s499_s7 = smov [#allocation10]  }
  0xc5   :  { %v158_v53 = vmax.f32 %v157_v52, 0.0 }
  0xc7   :  { %v160_v54 = vadd.f32 1e-05, %v158_v53 }
  0xc9   :  { %357 = vrsqrt.f32 %v160_v54  ;;  %vm167_vm1 = vweird.f32 %v160_v54 }
  0xcf   :  { %v358_v55 = vpop.eup %357 }
  0xd0   :  { %v162_v56 = vmul.f32 %v358_v55, %v160_v54  ;;  %vm168_vm0 = vweird.f32 %v358_v55 }
  0xd1   :  { %vm169_vm2 = vmor %vm167_vm1, %vm168_vm0 }
  0xd2   :  { %v163_v57 = vmul.f32 %v358_v55, %v162_v56 }
  0xd4   :  { %v164_v58 = vmul.f32 0.5, %v163_v57 }
  0xd6   :  { %v165_v59 = vsub.f32 1.5, %v164_v58 }
  0xd8   :  { %v166_v61 = vmul.f32 %v358_v55, %v165_v59 }
  0xda   :  { %v170_v62 = vsel %vm169_vm2, %v358_v55, %v166_v61  ;;  %v255_v55 = vld [vmem:[%s604_s8] sm:$0x1]  ;;  %s332_s8 = sshll.u32 %s499_s7, 4  ;;  %s333_s8 = int_to_ptr.vmem [resolvable:$true] %s332_s8 }
  0xdb   :  { %v171_v63 = vmul.f32 %v170_v62, %v159_v60 }
  0xdd   :  { %v173_v1 = vmul.f32 %v171_v63, %v147_v49  ;;  %v176_v2 = vperm.slane %v171_v63, 0  ;;  %v356_v63 = vld [vmem:[%s606_s10] ss:$0 sm:$0xff]  ;;  %s334_s10 = sshll.u32 %s607_s11, 4  ;;  %s335_s10 = int_to_ptr.hbm [resolvable:$true] %s334_s10 }
  0xdf   :  { %v174_v3 = vsub.f32 %v172_v0, %v173_v1  ;;  %v178_v4 = vmul.f32 %v176_v2, %v139_v29 }
  0xe1   :  { %v180_v5 = vperm.slane %v174_v3, 0 }
  0xe3   :  { %v182_v6 = vadd.f32 %v180_v5, %v178_v4 }
  0xe5   :  { %v183_v7 = vmax.f32 %v182_v6, 0.0 }
  0xe7   :  { %220 = vmatmul.f32.vlgmr.msra.gmra.mxu1 %v183_v7 }
 0x164   :  { %v221_v19 = vpop.f32.mrf.mxu1 }
 0x165   :  { %v222_v20 = vadd.f32 %v355_v16, %v221_v19 }
 0x167   :  { %v224_v22 = vrot.slane %v222_v20, 4  ;;  %v231_v23 = vmul.f32 %v222_v20, %v222_v20 }
 0x169   :  { %v225_v25 = vadd.f32 %v224_v22, %v222_v20  ;;  %v232_v26 = vrot.slane %v231_v23, 4 }
 0x16b   :  { %v226_v28 = vrot.slane %v225_v25, 2  ;;  %v233_v29 = vadd.f32 %v232_v26, %v231_v23 }
 0x16d   :  { %v227_v31 = vadd.f32 %v226_v28, %v225_v25  ;;  %v234_v32 = vrot.slane %v233_v29, 2 }
 0x16f   :  { %v235_v34 = vadd.f32 %v234_v32, %v233_v29  ;;  %v228_v36 = vrot.slane %v227_v31, 1 }
 0x171   :  { %v236_v37 = vrot.slane %v235_v34, 1  ;;  %v229_v38 = vadd.f32 %v228_v36, %v227_v31 }
 0x173   :  { %v237_v39 = vadd.f32 %v236_v37, %v235_v34  ;;  %v230_v40 = vmul.f32 0.125, %v229_v38 }
 0x175   :  { %v238_v41 = vmul.f32 0.125, %v237_v39  ;;  %v239_v42 = vmul.f32 %v230_v40, %v230_v40 }
 0x177   :  { %v240_v43 = vsub.f32 %v238_v41, %v239_v42 }
 0x179   :  { %v241_v44 = vmax.f32 %v240_v43, 0.0 }
 0x17b   :  { %v243_v45 = vadd.f32 1e-05, %v241_v44 }
 0x17d   :  { %359 = vrsqrt.f32 %v243_v45  ;;  %vm250_vm4 = vweird.f32 %v243_v45 }
 0x183   :  { %v360_v46 = vpop.eup %359 }
 0x184   :  { %v245_v47 = vmul.f32 %v360_v46, %v243_v45  ;;  %vm251_vm3 = vweird.f32 %v360_v46 }
 0x185   :  { %vm252_vm5 = vmor %vm250_vm4, %vm251_vm3 }
 0x186   :  { %v246_v48 = vmul.f32 %v360_v46, %v245_v47 }
 0x188   :  { %v247_v49 = vmul.f32 0.5, %v246_v48 }
 0x18a   :  { %v248_v50 = vsub.f32 1.5, %v247_v49 }
 0x18c   :  { %v249_v52 = vmul.f32 %v360_v46, %v248_v50 }
 0x18e   :  { %v253_v53 = vsel %vm252_vm5, %v360_v46, %v249_v52 }
 0x18f   :  { %v254_v54 = vmul.f32 %v253_v53, %v242_v51 }
 0x191   :  { %v256_v56 = vmul.f32 %v254_v54, %v230_v40  ;;  %v259_v57 = vperm.slane %v254_v54, 0 }
 0x193   :  { %v257_v58 = vsub.f32 %v255_v55, %v256_v56  ;;  %v261_v59 = vmul.f32 %v259_v57, %v222_v20 }
 0x195   :  { %v263_v60 = vperm.slane %v257_v58, 0 }
 0x197   :  { %v265_v61 = vadd.f32 %v263_v60, %v261_v59 }
 0x199   :  { %v266_v62 = vmax.f32 %v265_v61, 0.0 }
 0x19b   :  { %303 = vmatmul.f32.vlgmr.msra.gmra.mxu2 %v266_v62 }
 0x21e   :  { %v304_v0 = vpop.f32.mrf.mxu2 }
 0x21f   :  { %v305_v1 = vadd.f32 %v356_v63, %v304_v0 }
 0x221   :  { %v346_v2 = vmul.f32 -1.442695, %v305_v1 }
 0x223   :  { %361 = vpow2.f32 %v346_v2 }
 0x229   :  { %v362_v3 = vpop.eup %361 }
 0x22a   :  { %v310_v4 = vadd.f32 1.0, %v362_v3 }
 0x22c   :  { %363 = vrcp.f32 %v310_v4  ;;  %v322_v8 = vand.u32 2147483648, %v310_v4  ;;  %v320_v10 = vand.u32 2147483647, %v310_v4  ;;  %vm316_vm7 = vweird.f32 %v310_v4 }
 0x22e   :  { %v323_v12 = vor.u32 1.1754944e-38, %v322_v8  ;;  %vm321_vm9 = vcmp.eq.f32.partialorder %v320_v10, 8.507059e+37 }
 0x232   :  { %v364_v5 = vpop.eup %363 }
 0x233   :  { %v312_v6 = vmul.f32 %v364_v5, %v310_v4  ;;  %vm317_vm6 = vweird.f32 %v364_v5 }
 0x234   :  { %vm318_vm8 = vmor %vm316_vm7, %vm317_vm6 }
 0x235   :  { %v313_v7 = vsub.f32 1.0, %v312_v6 }
 0x237   :  { %v314_v9 = vmul.f32 %v364_v5, %v313_v7 }
 0x239   :  { %v315_v11 = vadd.f32 %v364_v5, %v314_v9 }
 0x23b   :  { %v319_v13 = vsel %vm318_vm8, %v364_v5, %v315_v11 }
 0x23c   :  { %v324_v14 = vsel %vm321_vm9, %v323_v12, %v319_v13 }
 0x23d   :  { %326 = vst [vmem:[#allocation10] sm:$0xff] %v324_v14 }
 0x23e   :  { %337 = dma.vmem_to_hbm [thread:$0]  %s333_s8, 128, %s335_s10, [#allocation4]  }
 0x23f   :  { %491 = dma.done.wait [#allocation4], 128  }
 0x240   :  { %492 = vsyncadd [#allocation4], 4294967168 }
 0x241   :  { %342 = vsyncpa [#allocation3], 1 }
 0x242   :  { %343 = vsyncpa [#allocation6], 1 }
 0x243   :  { %344 = vsyncpa [#allocation9], 1 }
 0x244   :  { %345 = vsyncpa [#allocation4], 1 }

</bundles_post_ra>
